<compile_context>
chip_gen: v6e
topology: v6e:2x2x1
jax: 0.10.0
libtpu: 0.0.40
codegen_flags: <defaults>
</compile_context>

<pallas_src>
import functools

import jax
import jax.numpy as jnp
from jax import lax
from jax.experimental import pallas as pl
from jax.experimental.pallas import tpu as pltpu


def _round_up(x, m):
    return ((x + m - 1) // m) * m


def _cdiv(a, b):
    return -(-a // b)


def _affine_kernel(x_ref, ss_ref, rot_ref, tr_ref, mask_ref, *,
                   scale_limit, shear_limit, trans_limit, adj_mask_para):
    """x_ref: (7, tb), rows = [out0..out5, mask_col], batch on lanes.

    Outputs (all lane-dense, one full-block store each):
      ss_ref  (6, tb): flattened 2x3 scaler_shear rows [s1, sh, 0, sh, s2, 0]
      rot_ref (6, tb): flattened 2x3 rotation rows     [c, -s, 0, s,  c,  0]
      tr_ref  (6, tb): flattened 2x3 translation rows  [1,  0, t1, 0, 1, t2]
      mask_ref(1, tb): adj_mask_para*tanh(mask_col) + 1
    """
    x = x_ref[...].astype(jnp.float32)          # (7, tb); bf16 upcast is free vs DMA
    t = jnp.tanh(x)                             # ONE EUP pass for all tanh consumers
    r = jnp.maximum(x[2:3, :], 0.0)             # ReLU rotation (rotate_value=None)
    c = jnp.cos(r)                              # (1, tb)
    s = jnp.sin(r)                              # (1, tb)

    s1 = scale_limit * t[0:1, :] + 1.0
    s2 = scale_limit * t[1:2, :] + 1.0
    sh = shear_limit * t[3:4, :]                # Symmetric: shear_1 == shear_2
    t1 = trans_limit * t[4:5, :]
    t2 = trans_limit * t[5:6, :]

    mask_ref[...] = adj_mask_para * t[6:7, :] + 1.0

    tb = x.shape[1]
    k = lax.broadcasted_iota(jnp.int32, (6, tb), 0)   # flattened (row,col) index of 2x3

    # scaler_shear rows: [s1, sh, 0, sh, s2, 0]
    ss_ref[...] = jnp.where(k == 0, s1,
                  jnp.where(k == 4, s2,
                  jnp.where((k == 1) | (k == 3), sh, 0.0)))
    # rotation rows: [cos, -sin, 0, sin, cos, 0]
    rot_ref[...] = jnp.where((k == 0) | (k == 4), c,
                   jnp.where(k == 1, -s,
                   jnp.where(k == 3, s, 0.0)))
    # translation rows: [1, 0, t1, 0, 1, t2]
    tr_ref[...] = jnp.where(k == 2, t1,
                  jnp.where(k == 5, t2,
                  jnp.where((k == 0) | (k == 4), 1.0, 0.0)))


def affine_transform(out, *, scale_limit=0.05, shear_limit=0.1,
                     trans_limit=0.15, adj_mask_para=0.0, embedding_size=6,
                     block_b=32768):
    B, E = out.shape
    assert E >= 6 and E > embedding_size, "need 6 affine cols + a mask column"

    # Keep f32/bf16 native; anything else is promoted to f32 in the wrapper.
    if out.dtype not in (jnp.float32, jnp.bfloat16):
        out = out.astype(jnp.float32)

    # Gather only the 7 live columns and put the batch on lanes.  With the
    # default embedding_size=6 this is a single fused slice+transpose; no pad.
    if embedding_size == 6:
        cols = out[:, :7]
    else:
        cols = jnp.concatenate(
            [out[:, :6], out[:, embedding_size:embedding_size + 1]], axis=1)
    x = jnp.transpose(cols)                     # (7, B)

    # Lane-tile selection: big tiles (DMA-bound, not step-overhead-bound),
    # >= 2 grid steps when possible (v7x megacore), capped for VMEM safety.
    if B <= 128:
        tb = B                                  # single full-dim block
    else:
        bp = _round_up(B, 128)
        tb_cap = max(128, min(_round_up(int(block_b), 128), 65536))
        tb = max(128, min(tb_cap, _round_up(_cdiv(bp, 2), 128)))
    grid = _cdiv(B, tb)

    # ~320*tb bytes of double-buffered pipeline buffers + temporaries; raise
    # the scoped-VMEM limit explicitly so v5e's 16 MiB default never bites.
    vmem_limit = int(min(100 * 2**20, max(32 * 2**20, 768 * tb)))

    kernel = functools.partial(
        _affine_kernel,
        scale_limit=float(scale_limit),
        shear_limit=float(shear_limit),
        trans_limit=float(trans_limit),
        adj_mask_para=float(adj_mask_para),
    )

    mat_spec = pl.BlockSpec((6, tb), lambda i: (0, i))
    ss_f, rot_f, tr_f, mask_f = pl.pallas_call(
        kernel,
        out_shape=(
            jax.ShapeDtypeStruct((6, B), jnp.float32),
            jax.ShapeDtypeStruct((6, B), jnp.float32),
            jax.ShapeDtypeStruct((6, B), jnp.float32),
            jax.ShapeDtypeStruct((1, B), jnp.float32),
        ),
        grid=(grid,),
        in_specs=[pl.BlockSpec((7, tb), lambda i: (0, i))],
        out_specs=(mat_spec, mat_spec, mat_spec,
                   pl.BlockSpec((1, tb), lambda i: (0, i))),
        compiler_params=pltpu.CompilerParams(
            dimension_semantics=("parallel",),
            vmem_limit_bytes=vmem_limit),
    )(x)

    # One transpose per matrix (reshape after it is free, row-major compatible).
    scaler_shear = jnp.transpose(ss_f).reshape(B, 2, 3)
    rotation = jnp.transpose(rot_f).reshape(B, 2, 3)
    translation = jnp.transpose(tr_f).reshape(B, 2, 3)
    mask = mask_f.reshape(B, 1)                  # (1,B)->(B,1): layout-identical
    return scaler_shear, rotation, translation, mask


def _reference(out, *, scale_limit=0.05, shear_limit=0.1, trans_limit=0.15,
               adj_mask_para=0.0, embedding_size=6):
    out = out.astype(jnp.float32)
    s1 = scale_limit * jnp.tanh(out[:, 0]) + 1.0
    s2 = scale_limit * jnp.tanh(out[:, 1]) + 1.0
    r = jax.nn.relu(out[:, 2])
    sh1 = shear_limit * jnp.tanh(out[:, 3])
    sh2 = sh1
    t1 = trans_limit * jnp.tanh(out[:, 4])
    t2 = trans_limit * jnp.tanh(out[:, 5])
    mask = adj_mask_para * jnp.tanh(out[:, embedding_size:embedding_size + 1]) + 1.0
    zero = jnp.zeros_like(s1)
    one = jnp.ones_like(s1)
    ss = jnp.stack([jnp.stack([s1, sh2, zero], -1),
                    jnp.stack([sh1, s2, zero], -1)], 1)
    rot = jnp.stack([jnp.stack([jnp.cos(r), -jnp.sin(r), zero], -1),
                     jnp.stack([jnp.sin(r), jnp.cos(r), zero], -1)], 1)
    tr = jnp.stack([jnp.stack([one, zero, t1], -1),
                    jnp.stack([zero, one, t2], -1)], 1)
    return ss, rot, tr, mask


if __name__ == "__main__":
    key = jax.random.PRNGKey(0)
    k1, k2 = jax.random.split(key)

    # Case 1: tiny (matches module defaults), single full-dim block (B=2).
    x_small = jax.random.normal(k1, (2, 8), dtype=jnp.float32)
    got = jax.block_until_ready(affine_transform(x_small))
    ref = _reference(x_small)
    for g, r in zip(got, ref):
        assert g.shape == r.shape, (g.shape, r.shape)
        assert jnp.allclose(g, r, atol=1e-5, rtol=1e-5)

    # Case 2: exercises the batch grid (2 steps) + an overhanging partial last
    # lane block (B=200 with tb=128), plus a wider embedding.
    x_big = jax.random.normal(k2, (200, 16), dtype=jnp.float32)
    got2 = jax.block_until_ready(affine_transform(x_big, block_b=128))
    ref2 = _reference(x_big)
    for g, r in zip(got2, ref2):
        assert g.shape == r.shape, (g.shape, r.shape)
        assert jnp.allclose(g, r, atol=1e-5, rtol=1e-5)

    # Case 3: non-default mask column / adj_mask_para, default (large) tile.
    got3 = jax.block_until_ready(
        affine_transform(x_big, adj_mask_para=0.3, embedding_size=9))
    ref3 = _reference(x_big, adj_mask_para=0.3, embedding_size=9)
    for g, r in zip(got3, ref3):
        assert g.shape == r.shape, (g.shape, r.shape)
        assert jnp.allclose(g, r, atol=1e-5, rtol=1e-5)

    print("KERNEL_OK")
</pallas_src>

<mosaic_0001>
module attributes {stable_mosaic.version = 11 : i64} {
  func.func @_affine_kernel(%arg0: i32, %arg1: memref<7x2xf32, #tpu.memory_space<vmem>>, %arg2: memref<6x2xf32, #tpu.memory_space<vmem>>, %arg3: memref<6x2xf32, #tpu.memory_space<vmem>>, %arg4: memref<6x2xf32, #tpu.memory_space<vmem>>, %arg5: memref<1x2xf32, #tpu.memory_space<vmem>>) attributes {dimension_semantics = [#tpu.dimension_semantics<parallel>], iteration_bounds = array<i64: 1>, scalar_prefetch = 0 : i64, scratch_operands = 0 : i64, tpu.core_type = #tpu.core_type<tc>, window_params = [{transform_indices = @transform_0, window_bounds = array<i64: 7, 2>}, {transform_indices = @transform_1, window_bounds = array<i64: 6, 2>}, {transform_indices = @transform_2, window_bounds = array<i64: 6, 2>}, {transform_indices = @transform_3, window_bounds = array<i64: 6, 2>}, {transform_indices = @transform_4, window_bounds = array<i64: 1, 2>}]} {
    %c0 = arith.constant 0 : index
    %c0_0 = arith.constant 0 : index
    %0 = vector.load %arg1[%c0, %c0_0] : memref<7x2xf32, #tpu.memory_space<vmem>>, vector<7x2xf32>
    %1 = math.tanh %0 : vector<7x2xf32>
    %2 = vector.extract_strided_slice %0 {offsets = [2, 0], sizes = [1, 2], strides = [1, 1]} : vector<7x2xf32> to vector<1x2xf32>
    %cst = arith.constant 0.000000e+00 : f32
    %3 = vector.broadcast %cst : f32 to vector<1x2xf32>
    %4 = arith.maximumf %2, %3 : vector<1x2xf32>
    %5 = math.cos %4 : vector<1x2xf32>
    %6 = math.sin %4 : vector<1x2xf32>
    %7 = vector.extract_strided_slice %1 {offsets = [0, 0], sizes = [1, 2], strides = [1, 1]} : vector<7x2xf32> to vector<1x2xf32>
    %cst_1 = arith.constant 5.000000e-02 : f32
    %8 = vector.broadcast %cst_1 : f32 to vector<1x2xf32>
    %9 = arith.mulf %8, %7 : vector<1x2xf32>
    %cst_2 = arith.constant 1.000000e+00 : f32
    %10 = vector.broadcast %cst_2 : f32 to vector<1x2xf32>
    %11 = arith.addf %9, %10 : vector<1x2xf32>
    %12 = vector.extract_strided_slice %1 {offsets = [1, 0], sizes = [1, 2], strides = [1, 1]} : vector<7x2xf32> to vector<1x2xf32>
    %cst_3 = arith.constant 5.000000e-02 : f32
    %13 = vector.broadcast %cst_3 : f32 to vector<1x2xf32>
    %14 = arith.mulf %13, %12 : vector<1x2xf32>
    %cst_4 = arith.constant 1.000000e+00 : f32
    %15 = vector.broadcast %cst_4 : f32 to vector<1x2xf32>
    %16 = arith.addf %14, %15 : vector<1x2xf32>
    %17 = vector.extract_strided_slice %1 {offsets = [3, 0], sizes = [1, 2], strides = [1, 1]} : vector<7x2xf32> to vector<1x2xf32>
    %cst_5 = arith.constant 1.000000e-01 : f32
    %18 = vector.broadcast %cst_5 : f32 to vector<1x2xf32>
    %19 = arith.mulf %18, %17 : vector<1x2xf32>
    %20 = vector.extract_strided_slice %1 {offsets = [4, 0], sizes = [1, 2], strides = [1, 1]} : vector<7x2xf32> to vector<1x2xf32>
    %cst_6 = arith.constant 1.500000e-01 : f32
    %21 = vector.broadcast %cst_6 : f32 to vector<1x2xf32>
    %22 = arith.mulf %21, %20 : vector<1x2xf32>
    %23 = vector.extract_strided_slice %1 {offsets = [5, 0], sizes = [1, 2], strides = [1, 1]} : vector<7x2xf32> to vector<1x2xf32>
    %cst_7 = arith.constant 1.500000e-01 : f32
    %24 = vector.broadcast %cst_7 : f32 to vector<1x2xf32>
    %25 = arith.mulf %24, %23 : vector<1x2xf32>
    %26 = vector.extract_strided_slice %1 {offsets = [6, 0], sizes = [1, 2], strides = [1, 1]} : vector<7x2xf32> to vector<1x2xf32>
    %cst_8 = arith.constant 0.000000e+00 : f32
    %27 = vector.broadcast %cst_8 : f32 to vector<1x2xf32>
    %28 = arith.mulf %27, %26 : vector<1x2xf32>
    %cst_9 = arith.constant 1.000000e+00 : f32
    %29 = vector.broadcast %cst_9 : f32 to vector<1x2xf32>
    %30 = arith.addf %28, %29 : vector<1x2xf32>
    %c0_10 = arith.constant 0 : index
    %c0_11 = arith.constant 0 : index
    %31 = vector.load %arg5[%c0_10, %c0_11] : memref<1x2xf32, #tpu.memory_space<vmem>>, vector<1x2xf32>
    tpu.vector_store %arg5[%c0_10, %c0_11], %30 {strides = array<i32>} : memref<1x2xf32, #tpu.memory_space<vmem>>, vector<1x2xf32>,
    %32 = tpu.iota {dimensions = array<i32: 0>} : vector<6x2xi32>
    %c0_i32 = arith.constant 0 : i32
    %33 = vector.broadcast %c0_i32 : i32 to vector<6x2xi32>
    %34 = arith.cmpi eq, %32, %33 : vector<6x2xi32>
    %c4_i32 = arith.constant 4 : i32
    %35 = vector.broadcast %c4_i32 : i32 to vector<6x2xi32>
    %36 = arith.cmpi eq, %32, %35 : vector<6x2xi32>
    %c1_i32 = arith.constant 1 : i32
    %37 = vector.broadcast %c1_i32 : i32 to vector<6x2xi32>
    %38 = arith.cmpi eq, %32, %37 : vector<6x2xi32>
    %c3_i32 = arith.constant 3 : i32
    %39 = vector.broadcast %c3_i32 : i32 to vector<6x2xi32>
    %40 = arith.cmpi eq, %32, %39 : vector<6x2xi32>
    %41 = arith.ori %38, %40 : vector<6x2xi1>
    %cst_12 = arith.constant 0.000000e+00 : f32
    %42 = vector.shape_cast %19 : vector<1x2xf32> to vector<1x2xf32>
    %43 = vector.broadcast %42 : vector<1x2xf32> to vector<6x2xf32>
    %44 = vector.broadcast %cst_12 : f32 to vector<6x2xf32>
    %45 = arith.select %41, %43, %44 : vector<6x2xi1>, vector<6x2xf32>
    %46 = vector.shape_cast %16 : vector<1x2xf32> to vector<1x2xf32>
    %47 = vector.broadcast %46 : vector<1x2xf32> to vector<6x2xf32>
    %48 = arith.select %36, %47, %45 : vector<6x2xi1>, vector<6x2xf32>
    %49 = vector.shape_cast %11 : vector<1x2xf32> to vector<1x2xf32>
    %50 = vector.broadcast %49 : vector<1x2xf32> to vector<6x2xf32>
    %51 = arith.select %34, %50, %48 : vector<6x2xi1>, vector<6x2xf32>
    %c0_13 = arith.constant 0 : index
    %c0_14 = arith.constant 0 : index
    %52 = vector.load %arg2[%c0_13, %c0_14] : memref<6x2xf32, #tpu.memory_space<vmem>>, vector<6x2xf32>
    tpu.vector_store %arg2[%c0_13, %c0_14], %51 {strides = array<i32>} : memref<6x2xf32, #tpu.memory_space<vmem>>, vector<6x2xf32>,
    %c0_i32_15 = arith.constant 0 : i32
    %53 = vector.broadcast %c0_i32_15 : i32 to vector<6x2xi32>
    %54 = arith.cmpi eq, %32, %53 : vector<6x2xi32>
    %c4_i32_16 = arith.constant 4 : i32
    %55 = vector.broadcast %c4_i32_16 : i32 to vector<6x2xi32>
    %56 = arith.cmpi eq, %32, %55 : vector<6x2xi32>
    %57 = arith.ori %54, %56 : vector<6x2xi1>
    %c1_i32_17 = arith.constant 1 : i32
    %58 = vector.broadcast %c1_i32_17 : i32 to vector<6x2xi32>
    %59 = arith.cmpi eq, %32, %58 : vector<6x2xi32>
    %cst_18 = arith.constant 0.000000e+00 : f32
    %60 = vector.broadcast %cst_18 : f32 to vector<1x2xf32>
    %61 = arith.subf %60, %6 : vector<1x2xf32>
    %c3_i32_19 = arith.constant 3 : i32
    %62 = vector.broadcast %c3_i32_19 : i32 to vector<6x2xi32>
    %63 = arith.cmpi eq, %32, %62 : vector<6x2xi32>
    %cst_20 = arith.constant 0.000000e+00 : f32
    %64 = vector.shape_cast %6 : vector<1x2xf32> to vector<1x2xf32>
    %65 = vector.broadcast %64 : vector<1x2xf32> to vector<6x2xf32>
    %66 = vector.broadcast %cst_20 : f32 to vector<6x2xf32>
    %67 = arith.select %63, %65, %66 : vector<6x2xi1>, vector<6x2xf32>
    %68 = vector.shape_cast %61 : vector<1x2xf32> to vector<1x2xf32>
    %69 = vector.broadcast %68 : vector<1x2xf32> to vector<6x2xf32>
    %70 = arith.select %59, %69, %67 : vector<6x2xi1>, vector<6x2xf32>
    %71 = vector.shape_cast %5 : vector<1x2xf32> to vector<1x2xf32>
    %72 = vector.broadcast %71 : vector<1x2xf32> to vector<6x2xf32>
    %73 = arith.select %57, %72, %70 : vector<6x2xi1>, vector<6x2xf32>
    %c0_21 = arith.constant 0 : index
    %c0_22 = arith.constant 0 : index
    %74 = vector.load %arg3[%c0_21, %c0_22] : memref<6x2xf32, #tpu.memory_space<vmem>>, vector<6x2xf32>
    tpu.vector_store %arg3[%c0_21, %c0_22], %73 {strides = array<i32>} : memref<6x2xf32, #tpu.memory_space<vmem>>, vector<6x2xf32>,
    %c2_i32 = arith.constant 2 : i32
    %75 = vector.broadcast %c2_i32 : i32 to vector<6x2xi32>
    %76 = arith.cmpi eq, %32, %75 : vector<6x2xi32>
    %c5_i32 = arith.constant 5 : i32
    %77 = vector.broadcast %c5_i32 : i32 to vector<6x2xi32>
    %78 = arith.cmpi eq, %32, %77 : vector<6x2xi32>
    %c0_i32_23 = arith.constant 0 : i32
    %79 = vector.broadcast %c0_i32_23 : i32 to vector<6x2xi32>
    %80 = arith.cmpi eq, %32, %79 : vector<6x2xi32>
    %c4_i32_24 = arith.constant 4 : i32
    %81 = vector.broadcast %c4_i32_24 : i32 to vector<6x2xi32>
    %82 = arith.cmpi eq, %32, %81 : vector<6x2xi32>
    %83 = arith.ori %80, %82 : vector<6x2xi1>
    %cst_25 = arith.constant 1.000000e+00 : f32
    %cst_26 = arith.constant 0.000000e+00 : f32
    %84 = vector.broadcast %cst_25 : f32 to vector<6x2xf32>
    %85 = vector.broadcast %cst_26 : f32 to vector<6x2xf32>
    %86 = arith.select %83, %84, %85 : vector<6x2xi1>, vector<6x2xf32>
    %87 = vector.shape_cast %25 : vector<1x2xf32> to vector<1x2xf32>
    %88 = vector.broadcast %87 : vector<1x2xf32> to vector<6x2xf32>
    %89 = arith.select %78, %88, %86 : vector<6x2xi1>, vector<6x2xf32>
    %90 = vector.shape_cast %22 : vector<1x2xf32> to vector<1x2xf32>
    %91 = vector.broadcast %90 : vector<1x2xf32> to vector<6x2xf32>
    %92 = arith.select %76, %91, %89 : vector<6x2xi1>, vector<6x2xf32>
    %c0_27 = arith.constant 0 : index
    %c0_28 = arith.constant 0 : index
    %93 = vector.load %arg4[%c0_27, %c0_28] : memref<6x2xf32, #tpu.memory_space<vmem>>, vector<6x2xf32>
    tpu.vector_store %arg4[%c0_27, %c0_28], %92 {strides = array<i32>} : memref<6x2xf32, #tpu.memory_space<vmem>>, vector<6x2xf32>,
    return
  }
  func.func @transform_0(%arg0: i32) -> (i32, i32) {
    %c0_i32 = arith.constant 0 : i32
    %c0_i32_0 = arith.constant 0 : i32
    return %c0_i32, %arg0 : i32, i32
  }
  func.func @transform_1(%arg0: i32) -> (i32, i32) {
    %c0_i32 = arith.constant 0 : i32
    %c0_i32_0 = arith.constant 0 : i32
    return %c0_i32, %arg0 : i32, i32
  }
  func.func @transform_2(%arg0: i32) -> (i32, i32) {
    %c0_i32 = arith.constant 0 : i32
    %c0_i32_0 = arith.constant 0 : i32
    return %c0_i32, %arg0 : i32, i32
  }
  func.func @transform_3(%arg0: i32) -> (i32, i32) {
    %c0_i32 = arith.constant 0 : i32
    %c0_i32_0 = arith.constant 0 : i32
    return %c0_i32, %arg0 : i32, i32
  }
  func.func @transform_4(%arg0: i32) -> (i32, i32) {
    %c0_i32 = arith.constant 0 : i32
    %c0_i32_0 = arith.constant 0 : i32
    return %c0_i32, %arg0 : i32, i32
  }
}

</mosaic_0001>

<bundles_post_ra>
// kernel: tpu_custom_call.1
= control target key start
LH: loop header
LB: loop body
LE: loop exit
PB: predicated region body
PF: predicated region fallthrough
CT: control target
= control target key end

     0   :  { %v231_v1 = vlaneseq  ;;  %s514_s0 = inlined_call_operand.vmem [shape: f32[7,2], index: 0, kind: input, shape index: {}]   ;;  %s515_s1 = inlined_call_operand.vmem [shape: f32[6,2], index: 1, kind: output, shape index: {0}]   ;;  %s516_s2 = inlined_call_operand.vmem [shape: f32[6,2], index: 2, kind: output, shape index: {1}]   ;;  %s517_s3 = inlined_call_operand.vmem [shape: f32[6,2], index: 3, kind: output, shape index: {2}]   ;;  %s518_s4 = inlined_call_operand.hbm [shape: f32[1,2], index: 4, kind: output, shape index: {3}]  }
   0x1   :  { %v13_v0 = vld [vmem:[%s514_s0] sm:$0x7f] }
   0x2   :  { %333 = vtanh.f32 %v13_v0  ;;  %v397_v2 = vmax.f32 %v13_v0, 0.0 }
   0x4   :  { %v16_v3 = vand.u32 2147483647, %v397_v2  ;;  %v19_v4 = vand.u32 2139095040, %v397_v2 }
   0x5   :  { %10 = vsyncpa [#allocation3], 0  ;;  %v401_v5 = vshrl.u32 %v231_v1, 7  ;;  %vm229_vm2 = vcmask 14342   ;;  %vm253_vm6 = vcmask 13312   ;;  %v361_v16 = vmov 0.0  }
   0x6   :  { %v20_v6 = vshrl.u32 %v19_v4, 23  ;;  %v23_v7 = vand.u32 8388607, %v16_v3  ;;  %s362_s0 = smov [#allocation2]   ;;  %v363_v29 = vmov 683565275  }
   0x7   :  { %vm233_vm0 = vcmp.eq.s32.totalorder %v401_v5, 0  ;;  %vm234_vm1 = vcmp.eq.s32.totalorder %v401_v5, 4  ;;  %vm235_vm4 = vcmp.eq.s32.totalorder %v401_v5, 1  ;;  %vm236_vm5 = vcmp.eq.s32.totalorder %v401_v5, 3  ;;  %s299_s17 = sshll.u32 %s362_s0, 4  ;;  %s300_s17 = int_to_ptr.vmem [resolvable:$true] %s299_s17 }
   0x8   :  { %v313_v8 = vadd.s32 4294967169, %v20_v6  ;;  %v24_v9 = vor.u32 8388608, %v23_v7  ;;  %vm411_vm3 = vmor %vm233_vm0, %vm234_vm1  ;;  %v240_v12 = vsub.s32 3, %v401_v5  ;;  %v245_v13 = vsub.s32 1, %v401_v5  ;;  %s339_s18 = scalar_lea.vmem %s300_s17, 16  ;;  %s343_s19 = scalar_lea.vmem %s300_s17, 32 }
   0x9   :  { %v250_v14 = vsub.s32 0, %v401_v5  ;;  %v422_v17 = vsel %vm411_vm3, 1.0, %v361_v16  ;;  %v278_v21 = vsub.s32 5, %v401_v5  ;;  %v283_v22 = vsub.s32 4, %v401_v5  ;;  %vm439_vm8 = vmor %vm235_vm4, %vm236_vm5  ;;  %p340_p0 = scmp.ne.s32.totalorder %s300_s17, %s339_s18  ;;  %p344_p1 = scmp.lt.s32.totalorder %s300_s17, %s300_s17 }
   0xa   :  { %v26_v10 = vadd.s32 1, %v313_v8  ;;  %v426_v20 = vshll.u32 %v24_v9, 8  ;;  %v364_v31 = vmov 2475754826   ;;  %v365_v33 = vmov 2131351028   ;;  %p345_p2 = scmp.lt.s32.totalorder %s343_s19, %s339_s18 }
   0xb   :  { %v366_v38 = vmov 2102212464   ;;  %v367_v47 = vmov 920167782  }
   0xc   :  { %vm27_vm7 = vcmp.gt.s32.totalorder %v26_v10, 0  ;;  %p346_p3 = por %p345_p2, %p344_p1 }
   0xd   :  { %v28_v15 = vsel %vm27_vm7, %v26_v10, 0 }
   0xe   :  { %v30_v19 = vand.u32 31, %v28_v15  ;;  %v433_v26 = vshrl.u32 %v28_v15, 5  ;;  %p347_p4 = pnand %p346_p3, %p340_p0 }
   0xf   :  { %v424_v18 = vpop.eup %333 }
  0x10   :  { %v227_v23 = vmul.f32 0.0, %v424_v18  ;;  %v223_v24 = vmul.f32 0.05, %v424_v18  ;;  %v225_v25 = vmul.f32 0.1, %v424_v18  ;;  %v31_v28 = vsub.s32 32, %v30_v19 }
  0x11   :  { %v33_v30 = vshll.u32 %v363_v29, %v30_v19  ;;  %v36_v32 = vshll.u32 %v364_v31, %v30_v19  ;;  %v39_v34 = vshll.u32 %v365_v33, %v30_v19  ;;  %v42_v39 = vshll.u32 %v366_v38, %v30_v19 }
  0x12   :  { %v228_v35 = vadd.f32 1.0, %v227_v23  ;;  %v224_v36 = vadd.f32 1.0, %v223_v24  ;;  %v241_v37 = vrot.slane %v225_v25, %v240_v12  ;;  %v32_v40 = vshrl.u32 %v363_v29, %v31_v28 }
  0x13   :  { %v34_v41 = vshrl.u32 %v364_v31, %v31_v28  ;;  %v37_v42 = vshrl.u32 %v365_v33, %v31_v28  ;;  %v40_v43 = vshrl.u32 %v366_v38, %v31_v28  ;;  %v43_v48 = vshrl.u32 %v367_v47, %v31_v28 }
  0x14   :  { %230 = vst.msk [vmem:[#allocation2 - $0x6] sm:$0x40] %vm229_vm2, %v228_v35  ;;  %v242_v44 = vsel %vm439_vm8, %v241_v37, 0.0  ;;  %v246_v45 = vrot.slane %v224_v36, %v245_v13  ;;  %v251_v46 = vrot.slane %v224_v36, %v250_v14  ;;  %v45_v52 = vshll.u32 %v367_v47, %v30_v19 }
  0x15   :  { %v35_v49 = vor.u32 %v34_v41, %v33_v30  ;;  %v38_v50 = vor.u32 %v37_v42, %v36_v32  ;;  %v41_v51 = vor.u32 %v40_v43, %v39_v34 }
  0x16   :  { %350 = shalt.err (!%p347_p4)
}
  0x17   :  { %302 = dma.vmem_to_hbm [thread:$0]  %s300_s17, 16, %s518_s4, [#allocation3]   ;;  %v247_v53 = vsel %vm234_vm1, %v246_v45, %v242_v44  ;;  %v44_v54 = vor.u32 %v43_v48, %v42_v39  ;;  %v368_v55 = vmov 1326507024   ;;  %vm48_vm9 = vcmp.lt.s32.totalorder %v433_v26, 1 }
  0x18   :  { %v46_v56 = vshrl.u32 %v368_v55, %v31_v28  ;;  %v252_v57 = vsel %vm233_vm0, %v251_v46, %v247_v53  ;;  %vm49_vm10 = vcmp.lt.s32.totalorder %v433_v26, 2  ;;  %vm50_vm11 = vcmp.lt.s32.totalorder %v433_v26, 3 }
  0x19   :  { %vm51_vm12 = vcmp.lt.s32.totalorder %v433_v26, 4  ;;  %254 = vst.msk [vmem:[%s515_s1] sm:$0x3f] %vm253_vm6, %v252_v57  ;;  %v52_v59 = vsel %vm48_vm9, %v32_v40, %v35_v49  ;;  %v56_v61 = vsel %vm48_vm9, %v35_v49, %v38_v50  ;;  %v60_v0 = vsel %vm48_vm9, %v38_v50, %v41_v51 }
  0x1a   :  { %v47_v58 = vor.u32 %v46_v56, %v45_v52  ;;  %v53_v60 = vsel %vm51_vm12, %v41_v51, 2102212464  ;;  %v57_v63 = vsel %vm51_vm12, %v44_v54, 920167782  ;;  %v226_v1 = vmul.f32 0.15, %v424_v18 }
  0x1b   :  { %v54_v62 = vsel %vm50_vm11, %v38_v50, %v53_v60  ;;  %v58_v4 = vsel %vm50_vm11, %v41_v51, %v57_v63  ;;  %vm273_vm13 = vcmp.eq.s32.totalorder %v401_v5, 2  ;;  %vm274_vm14 = vcmp.eq.s32.totalorder %v401_v5, 5 }
  0x1c   :  { %v61_v6 = vsel %vm51_vm12, %v47_v58, 1326507024  ;;  %v55_v7 = vsel %vm49_vm10, %v52_v59, %v54_v62  ;;  %v59_v8 = vsel %vm49_vm10, %v56_v61, %v58_v4  ;;  %v279_v10 = vrot.slane %v226_v1, %v278_v21 }
  0x1d   :  { %v62_v9 = vsel %vm50_vm11, %v44_v54, %v61_v6  ;;  %v479_v13 = vmul.u32.u64.low %v426_v20, %v59_v8  ;;  %v480_v14 = vmul.u32.u64.high %v426_v20, %v59_v8, %v479_v13  ;;  %v284_v15 = vrot.slane %v226_v1, %v283_v22 }
  0x1e   :  { %v63_v12 = vsel %vm49_vm10, %v60_v0, %v62_v9  ;;  %v280_v19 = vsel %vm274_vm14, %v279_v10, %v422_v17  ;;  %v71_v24 = vmul.u32 %v426_v20, %v55_v7  ;;  %vm18_vm1 = vcmp.lt.s32.totalorder %v397_v2, 0 }
  0x1f   :  { %v485_v16 = vmul.u32.u64.low %v426_v20, %v63_v12  ;;  %v486_v18 = vmul.u32.u64.high %v426_v20, %v63_v12, %v485_v16  ;;  %v285_v23 = vsel %vm273_vm13, %v284_v15, %v280_v19  ;;  %v74_v21 = vadd.s32 1, %v480_v14 }
  0x20   :  { %286 = vst.msk [vmem:[%s517_s3] sm:$0x3f] %vm253_vm6, %v285_v23  ;;  %vm17_vm2 = vcmp.le.f32.partialorder %v16_v3, 0.7853982  ;;  %vm108_vm13 = vweird.f32 %v397_v2  ;;  %v259_v59 = vsub.s32 2, %v401_v5 }
  0x21   :  { %vm73_vm15 = vc.u32 %v486_v18, %v479_v13  ;;  %v72_v32 = vadd.s32 %v479_v13, %v486_v18 }
  0x22   :  { %v75_v22 = vsel %vm73_vm15, %v74_v21, %v480_v14 }
  0x23   :  { %v76_v25 = vadd.s32 %v75_v22, %v71_v24 }
  0x25   :  { %v77_v26 = vadd.s32 536870912, %v76_v25 }
  0x27   :  { %v78_v27 = vshrl.u32 %v77_v26, 30 }
  0x29   :  { %v79_v28 = vshll.u32 %v78_v27, 30  ;;  %v102_v45 = vsub.s32 4, %v78_v27 }
  0x2b   :  { %v80_v29 = vsub.s32 %v76_v25, %v79_v28  ;;  %v103_v48 = vsel %vm18_vm1, %v102_v45, %v78_v27 }
  0x2c   :  { %v105_v50 = vsel %vm17_vm2, 0, %v103_v48 }
  0x2d   :  { %v82_v17 = vsub.s32 0, %v80_v29  ;;  %v212_v51 = vadd.s32 3, %v105_v50  ;;  %v109_v52 = vand.u32 3, %v105_v50 }
  0x2f   :  { %v314_v30 = vmin.u32 %v82_v17, %v80_v29  ;;  %v213_v53 = vand.u32 3, %v212_v51  ;;  %vm114_vm7 = vcmp.eq.s32.totalorder %v109_v52, 2  ;;  %vm111_vm9 = vcmp.eq.s32.totalorder %v109_v52, 0 }
  0x30   :  { %vm110_vm11 = vcmp.lt.s32.totalorder %v109_v52, 2 }
  0x31   :  { %v84_v31 = vclz %v314_v30  ;;  %vm218_vm8 = vcmp.eq.s32.totalorder %v213_v53, 2  ;;  %vm215_vm10 = vcmp.eq.s32.totalorder %v213_v53, 0  ;;  %vm214_vm12 = vcmp.lt.s32.totalorder %v213_v53, 2 }
  0x33   :  { %v315_v20 = vadd.s32 4294967294, %v84_v31 }
  0x35   :  { %vm316_vm0 = vcmp.lt.s32.totalorder %v315_v20, 0 }
  0x36   :  { %v87_v33 = vsel %vm316_vm0, 0, %v315_v20 }
  0x37   :  { %v88_v34 = vsub.s32 32, %v87_v33  ;;  %v89_v35 = vshll.u32 %v80_v29, %v87_v33  ;;  %v92_v36 = vsub.s32 4294967266, %v87_v33 }
  0x39   :  { %v90_v37 = vshrl.u32 %v72_v32, %v88_v34  ;;  %v93_v38 = vadd.s32 127, %v92_v36 }
  0x3b   :  { %v91_v39 = vor.u32 %v90_v37, %v89_v35  ;;  %v94_v40 = vshll.u32 %v93_v38, 23 }
  0x3d   :  { %v95_v41 = vor.u32 4788187, %v94_v40  ;;  %v98_v42 = vcvt.s32.f32 %v91_v39 }
  0x3f   :  { %v96_v43 = vand.u32 2147483647, %v95_v41 }
  0x41   :  { %v99_v44 = vmul.f32 %v98_v42, %v96_v43 }
  0x43   :  { %v100_v46 = vxor.u32 2147483648, %v99_v44 }
  0x45   :  { %v101_v47 = vsel %vm18_vm1, %v100_v46, %v99_v44 }
  0x46   :  { %v104_v49 = vsel %vm17_vm2, %v397_v2, %v101_v47 }
  0x47   :  { %335 = vcosq.f32 %v104_v49 }
  0x48   :  { %337 = vsinq.f32 %v104_v49 }
  0x54   :  { %v336_v54 = vpop.eup %335 }
  0x55   :  { %v338_v55 = vpop.eup %337  ;;  %v115_v56 = vxor.u32 2147483648, %v336_v54 }
  0x56   :  { %v112_v3 = vxor.u32 2147483648, %v338_v55 }
  0x57   :  { %v116_v57 = vsel %vm114_vm7, %v115_v56, %v338_v55  ;;  %v220_v58 = vsel %vm218_vm8, %v115_v56, %v338_v55 }
  0x58   :  { %v113_v60 = vsel %vm111_vm9, %v336_v54, %v112_v3  ;;  %v217_v61 = vsel %vm215_vm10, %v336_v54, %v112_v3 }
  0x59   :  { %v117_v62 = vsel %vm110_vm11, %v113_v60, %v116_v57  ;;  %v221_v63 = vsel %vm214_vm12, %v217_v61, %v220_v58 }
  0x5a   :  { %v118_v0 = vsel %vm108_vm13, nan, %v117_v62  ;;  %v222_v1 = vsel %vm108_vm13, nan, %v221_v63 }
  0x5b   :  { %v256_v4 = vsub.f32 0.0, %v222_v1  ;;  %v260_v6 = vrot.slane %v222_v1, %v259_v59  ;;  %v270_v7 = vrot.slane %v118_v0, %v259_v59 }
  0x5d   :  { %v261_v8 = vsel %vm236_vm5, %v260_v6, 0.0  ;;  %v265_v9 = vrot.slane %v256_v4, %v259_v59 }
  0x5f   :  { %v266_v2 = vsel %vm235_vm4, %v265_v9, %v261_v8 }
  0x60   :  { %v271_v10 = vsel %vm411_vm3, %v270_v7, %v266_v2 }
  0x61   :  { %272 = vst.msk [vmem:[%s516_s2] sm:$0x3f] %vm253_vm6, %v271_v10 }
  0x62   :  { %359 = dma.done.wait [#allocation3], 16  }
  0x63   :  { %360 = vsyncadd [#allocation3], 4294967280 }
  0x64   :  { %312 = vsyncpa [#allocation3], 1 }

</bundles_post_ra>
